<compile_context>
chip_gen: v5e
topology: v5e:2x2
jax: 0.10.0
libtpu: 0.0.40
codegen_flags: <defaults>
</compile_context>

<pallas_src>
import math
from functools import partial

import jax
import jax.numpy as jnp
from jax.experimental import pallas as pl
from jax.experimental.pallas import tpu as pltpu


def _round_up(x, m):
    return ((x + m - 1) // m) * m


# ----------------------------------------------------------------------------
# Pallas kernel: fused twin-head MLP on one batch tile.
#   xu_ref : [TB, d_in]           (state | action, concatenated)
#   w1_ref : [d_in, Hp], b1: [1, Hp]
#   w2_ref : [n_blk, blk, blk], b2: [1, Hp]     (Hp = n_blk * blk)
#   w3_ref : [n_blk, blk, 128], b3: [1, 128]    (col 0 -> q1, col 1 -> q2)
#   q_ref  : [TB, 128]            (lane-dense output)
# ----------------------------------------------------------------------------
def _critic_kernel(xu_ref, w1_ref, b1_ref, w2_ref, b2_ref, w3_ref, b3_ref,
                   q_ref, *, matmul_dtype):
    n_blk, blk, _ = w2_ref.shape  # static

    # Layer 1: both heads at once.
    xu = xu_ref[...].astype(matmul_dtype)
    h = jnp.dot(xu, w1_ref[...].astype(matmul_dtype),
                preferred_element_type=jnp.float32)
    h = jnp.maximum(h + b1_ref[...], 0.0)

    # Layers 2+3, per head-block (static Python loop over 1 or 2 blocks).
    q = b3_ref[...]                                   # [1, 128], broadcasts
    for b in range(n_blk):
        hb = h[:, b * blk:(b + 1) * blk]              # static 128-aligned slice
        hb = jnp.dot(hb.astype(matmul_dtype), w2_ref[b].astype(matmul_dtype),
                     preferred_element_type=jnp.float32)
        hb = jnp.maximum(hb + b2_ref[:, b * blk:(b + 1) * blk], 0.0)
        q = q + jnp.dot(hb.astype(matmul_dtype), w3_ref[b].astype(matmul_dtype),
                        preferred_element_type=jnp.float32)

    q_ref[...] = q.astype(q_ref.dtype)                # lane-dense [TB, 128]


# ----------------------------------------------------------------------------
# Wrapper: batch-tiled grid, resident weights, lane-dense fused output.
# ----------------------------------------------------------------------------
def critic_forward(state, action, packed, *, batch_tile=1024,
                   matmul_dtype=jnp.float32, core_parallel=False):
    """Pallas-backed Critic.forward(state, action) -> (q1, q2)."""
    B, d_s = state.shape
    _, d_a = action.shape
    d_in = d_s + d_a
    H = packed["meta"]["hidden_dim"]
    n_blk, blk, _ = packed["w2"].shape
    Hp = n_blk * blk

    # Fuse state|action into one streamed input (single BlockSpec / DMA / dot).
    xu = jnp.concatenate([state.astype(jnp.float32),
                          action.astype(jnp.float32)], axis=1)

    # Batch tile: as few grid steps as possible, minimal padding, multiple of 8.
    n_tiles = max(1, pl.cdiv(B, batch_tile))
    TB = _round_up(pl.cdiv(B, n_tiles), 8)
    Bp = n_tiles * TB
    if Bp != B:
        xu = jnp.pad(xu, ((0, Bp - B), (0, 0)))

    # Cost estimate with REAL (un-padded) FLOPs.
    flops = 2 * Bp * (d_in * 2 * H + 2 * H * H + 2 * H * 1)
    weight_bytes = 4 * (d_in * Hp + Hp + n_blk * blk * blk + Hp
                        + n_blk * blk * 128 + 128)
    bytes_accessed = 4 * Bp * (d_in + 128) + weight_bytes

    # v7x: engage both TensorCores on the batch axis; plain "parallel" elsewhere.
    dim_sem = (pltpu.CORE_PARALLEL,) if core_parallel else ("parallel",)

    q = pl.pallas_call(
        partial(_critic_kernel, matmul_dtype=matmul_dtype),
        out_shape=jax.ShapeDtypeStruct((Bp, 128), jnp.float32),
        grid_spec=pltpu.PrefetchScalarGridSpec(
            num_scalar_prefetch=0,
            grid=(n_tiles,),
            in_specs=[
                # Streamed activations: batch-tiled.
                pl.BlockSpec((TB, d_in), lambda i: (i, 0)),
                # Weights / biases: constant index_map -> resident in VMEM.
                pl.BlockSpec((d_in, Hp), lambda i: (0, 0)),
                pl.BlockSpec((1, Hp), lambda i: (0, 0)),
                pl.BlockSpec((n_blk, blk, blk), lambda i: (0, 0, 0)),
                pl.BlockSpec((1, Hp), lambda i: (0, 0)),
                pl.BlockSpec((n_blk, blk, 128), lambda i: (0, 0, 0)),
                pl.BlockSpec((1, 128), lambda i: (0, 0)),
            ],
            out_specs=pl.BlockSpec((TB, 128), lambda i: (i, 0)),
        ),
        compiler_params=pltpu.CompilerParams(dimension_semantics=dim_sem),
        cost_estimate=pl.CostEstimate(
            flops=flops, transcendentals=0, bytes_accessed=bytes_accessed
        ),
    )(
        xu,
        packed["w1"], packed["b1"],
        packed["w2"], packed["b2"],
        packed["w3"], packed["b3"],
    )

    q = q[:B]
    return q[:, 0:1], q[:, 1:2]


# ----------------------------------------------------------------------------
# Parameter init (xavier_uniform weights, zero biases) in the original
# per-layer [in, out] layout, matching weights_init() on every nn.Linear.
# ----------------------------------------------------------------------------
def xavier_uniform(key, fan_in, fan_out):
    bound = math.sqrt(6.0 / (fan_in + fan_out))
    return jax.random.uniform(
        key, (fan_in, fan_out), dtype=jnp.float32, minval=-bound, maxval=bound
    )


def init_critic_params(key, num_inputs, num_actions, hidden_dim):
    d_in = num_inputs + num_actions
    keys = jax.random.split(key, 6)
    return {
        "w1": xavier_uniform(keys[0], d_in, hidden_dim),
        "b1": jnp.zeros((1, hidden_dim), jnp.float32),
        "w2": xavier_uniform(keys[1], hidden_dim, hidden_dim),
        "b2": jnp.zeros((1, hidden_dim), jnp.float32),
        "w3": xavier_uniform(keys[2], hidden_dim, 1),
        "b3": jnp.zeros((1, 1), jnp.float32),
        "w4": xavier_uniform(keys[3], d_in, hidden_dim),
        "b4": jnp.zeros((1, hidden_dim), jnp.float32),
        "w5": xavier_uniform(keys[4], hidden_dim, hidden_dim),
        "b5": jnp.zeros((1, hidden_dim), jnp.float32),
        "w6": xavier_uniform(keys[5], hidden_dim, 1),
        "b6": jnp.zeros((1, 1), jnp.float32),
    }


# ----------------------------------------------------------------------------
# One-time packing of the twin heads into the fused / per-head-block,
# 128-padded layout consumed by the kernel.  Zero padding is mathematically
# inert (relu(0)=0, 0*x=0), so the math matches the un-padded reference.
# ----------------------------------------------------------------------------
def pack_critic_params(p, num_inputs, num_actions, hidden_dim):
    H = hidden_dim
    d_in = num_inputs + num_actions

    if 2 * H <= 128:
        # Both heads fit in one 128-lane block: block-diagonal fusion is free.
        n_blk, blk = 1, 128
        head_cols = (0, H)            # lane offset of head-1 / head-2 hidden
    else:
        # Per-head blocks: avoids the 2x FLOP / VMEM cost of a [2H,2H] blockdiag.
        blk = _round_up(H, 128)
        n_blk = 2
        head_cols = (0, blk)
    Hp = n_blk * blk

    # Layer 1: [d_in, Hp] with head-1 / head-2 in their lane blocks.
    w1f = jnp.zeros((d_in, Hp), jnp.float32)
    w1f = w1f.at[:, head_cols[0]:head_cols[0] + H].set(p["w1"])
    w1f = w1f.at[:, head_cols[1]:head_cols[1] + H].set(p["w4"])
    b1f = jnp.zeros((1, Hp), jnp.float32)
    b1f = b1f.at[:, head_cols[0]:head_cols[0] + H].set(p["b1"])
    b1f = b1f.at[:, head_cols[1]:head_cols[1] + H].set(p["b4"])

    # Layer 2: n_blk blocks of [blk, blk].
    w2f = jnp.zeros((n_blk, blk, blk), jnp.float32)
    b2f = jnp.zeros((1, Hp), jnp.float32)
    if n_blk == 1:
        w2f = w2f.at[0, :H, :H].set(p["w2"]).at[0, H:2 * H, H:2 * H].set(p["w5"])
    else:
        w2f = w2f.at[0, :H, :H].set(p["w2"]).at[1, :H, :H].set(p["w5"])
    b2f = b2f.at[:, head_cols[0]:head_cols[0] + H].set(p["b2"])
    b2f = b2f.at[:, head_cols[1]:head_cols[1] + H].set(p["b5"])

    # Layer 3: n_blk blocks of [blk, 128] (lane-dense output: col 0 -> q1,
    # col 1 -> q2, remaining 126 lanes are zero padding).
    w3f = jnp.zeros((n_blk, blk, 128), jnp.float32)
    if n_blk == 1:
        w3f = w3f.at[0, :H, 0:1].set(p["w3"]).at[0, H:2 * H, 1:2].set(p["w6"])
    else:
        w3f = w3f.at[0, :H, 0:1].set(p["w3"]).at[1, :H, 1:2].set(p["w6"])
    b3f = jnp.zeros((1, 128), jnp.float32)
    b3f = b3f.at[:, 0:1].set(p["b3"]).at[:, 1:2].set(p["b6"])

    return {
        "w1": w1f, "b1": b1f,
        "w2": w2f, "b2": b2f,
        "w3": w3f, "b3": b3f,
        "meta": {"hidden_dim": H, "d_in": d_in},
    }


# ----------------------------------------------------------------------------
# Pure-JAX reference (un-fused, un-padded) for correctness checking.
# ----------------------------------------------------------------------------
def critic_forward_ref(state, action, p):
    xu = jnp.concatenate([state, action], axis=1)
    h1 = jax.nn.relu(xu @ p["w1"] + p["b1"])
    h1 = jax.nn.relu(h1 @ p["w2"] + p["b2"])
    q1 = h1 @ p["w3"] + p["b3"]
    h2 = jax.nn.relu(xu @ p["w4"] + p["b4"])
    h2 = jax.nn.relu(h2 @ p["w5"] + p["b5"])
    q2 = h2 @ p["w6"] + p["b6"]
    return q1, q2


if __name__ == "__main__":
    # --- case 1: small hidden (fused block-diagonal path), tiny batch -------
    num_inputs, num_actions, hidden_dim = 8, 4, 32
    key = jax.random.PRNGKey(0)
    k_params, k_state, k_action = jax.random.split(key, 3)

    params = init_critic_params(k_params, num_inputs, num_actions, hidden_dim)
    packed = pack_critic_params(params, num_inputs, num_actions, hidden_dim)

    batch = 8
    state = jax.random.normal(k_state, (batch, num_inputs), dtype=jnp.float32)
    action = jax.random.normal(k_action, (batch, num_actions), dtype=jnp.float32)

    q1, q2 = critic_forward(state, action, packed)
    jax.block_until_ready((q1, q2))
    q1_ref, q2_ref = critic_forward_ref(state, action, params)
    assert q1.shape == (batch, 1) and q2.shape == (batch, 1)
    assert jnp.allclose(q1, q1_ref, atol=1e-4, rtol=1e-4)
    assert jnp.allclose(q2, q2_ref, atol=1e-4, rtol=1e-4)

    # --- case 2: non-multiple batch (single grid step, minimal row padding) --
    batch2 = 300
    k_s2, k_a2 = jax.random.split(jax.random.PRNGKey(1))
    state2 = jax.random.normal(k_s2, (batch2, num_inputs), dtype=jnp.float32)
    action2 = jax.random.normal(k_a2, (batch2, num_actions), dtype=jnp.float32)

    q1b, q2b = critic_forward(state2, action2, packed)
    jax.block_until_ready((q1b, q2b))
    q1b_ref, q2b_ref = critic_forward_ref(state2, action2, params)
    assert q1b.shape == (batch2, 1) and q2b.shape == (batch2, 1)
    assert jnp.allclose(q1b, q1b_ref, atol=1e-4, rtol=1e-4)
    assert jnp.allclose(q2b, q2b_ref, atol=1e-4, rtol=1e-4)

    # --- case 3: larger hidden (per-head-block layer-2 path, 2*H > 128) ------
    hidden_big = 160
    params_big = init_critic_params(jax.random.PRNGKey(2),
                                    num_inputs, num_actions, hidden_big)
    packed_big = pack_critic_params(params_big, num_inputs, num_actions, hidden_big)
    batch3 = 40
    k_s3, k_a3 = jax.random.split(jax.random.PRNGKey(3))
    state3 = jax.random.normal(k_s3, (batch3, num_inputs), dtype=jnp.float32)
    action3 = jax.random.normal(k_a3, (batch3, num_actions), dtype=jnp.float32)

    q1c, q2c = critic_forward(state3, action3, packed_big)
    jax.block_until_ready((q1c, q2c))
    q1c_ref, q2c_ref = critic_forward_ref(state3, action3, params_big)
    assert q1c.shape == (batch3, 1) and q2c.shape == (batch3, 1)
    assert jnp.allclose(q1c, q1c_ref, atol=1e-4, rtol=1e-4)
    assert jnp.allclose(q2c, q2c_ref, atol=1e-4, rtol=1e-4)

    # --- case 4: optional bf16 MXU operands (v6e/v7x fast path), loose tol ---
    q1d, q2d = critic_forward(state2, action2, packed,
                              matmul_dtype=jnp.bfloat16)
    jax.block_until_ready((q1d, q2d))
    assert q1d.shape == (batch2, 1) and q2d.shape == (batch2, 1)
    assert jnp.allclose(q1d, q1b_ref, atol=1e-1, rtol=1e-1)
    assert jnp.allclose(q2d, q2b_ref, atol=1e-1, rtol=1e-1)

    # TODO(synk): on v7x pass core_parallel=True to shard batch tiles across
    # both TensorCores (left off by default so the script runs on any TPU gen).

    print("KERNEL_OK")
</pallas_src>

<mosaic_0001>
module attributes {stable_mosaic.version = 11 : i64} {
  func.func @_critic_kernel(%arg0: i32, %arg1: memref<8x12xf32, #tpu.memory_space<vmem>>, %arg2: memref<12x128xf32, #tpu.memory_space<vmem>>, %arg3: memref<1x128xf32, #tpu.memory_space<vmem>>, %arg4: memref<1x128x128xf32, #tpu.memory_space<vmem>>, %arg5: memref<1x128xf32, #tpu.memory_space<vmem>>, %arg6: memref<1x128x128xf32, #tpu.memory_space<vmem>>, %arg7: memref<1x128xf32, #tpu.memory_space<vmem>>, %arg8: memref<8x128xf32, #tpu.memory_space<vmem>>) attributes {dimension_semantics = [#tpu.dimension_semantics<parallel>], iteration_bounds = array<i64: 1>, scalar_prefetch = 0 : i64, scratch_operands = 0 : i64, tpu.core_type = #tpu.core_type<tc>, window_params = [{transform_indices = @transform_0, window_bounds = array<i64: 8, 12>}, {pipeline_mode = #tpu.pipeline_mode<synchronous>, transform_indices = @transform_1, window_bounds = array<i64: 12, 128>}, {pipeline_mode = #tpu.pipeline_mode<synchronous>, transform_indices = @transform_2, window_bounds = array<i64: 1, 128>}, {pipeline_mode = #tpu.pipeline_mode<synchronous>, transform_indices = @transform_3, window_bounds = array<i64: 1, 128, 128>}, {pipeline_mode = #tpu.pipeline_mode<synchronous>, transform_indices = @transform_4, window_bounds = array<i64: 1, 128>}, {pipeline_mode = #tpu.pipeline_mode<synchronous>, transform_indices = @transform_5, window_bounds = array<i64: 1, 128, 128>}, {pipeline_mode = #tpu.pipeline_mode<synchronous>, transform_indices = @transform_6, window_bounds = array<i64: 1, 128>}, {transform_indices = @transform_7, window_bounds = array<i64: 8, 128>}]} {
    %c0 = arith.constant 0 : index
    %c0_0 = arith.constant 0 : index
    %0 = vector.load %arg1[%c0, %c0_0] : memref<8x12xf32, #tpu.memory_space<vmem>>, vector<8x12xf32>
    %c0_1 = arith.constant 0 : index
    %c0_2 = arith.constant 0 : index
    %1 = vector.load %arg2[%c0_1, %c0_2] : memref<12x128xf32, #tpu.memory_space<vmem>>, vector<12x128xf32>
    %cst = arith.constant dense<0.000000e+00> : vector<8x128xf32>
    %2 = tpu.matmul %0, %1, %cst {dimension_numbers = #tpu.dot_dimension_numbers<[1], [0], [0], [1], [0, 0, 1, 1], [], []>} : vector<8x12xf32>, vector<12x128xf32>, vector<8x128xf32> -> vector<8x128xf32>
    %c0_3 = arith.constant 0 : index
    %c0_4 = arith.constant 0 : index
    %3 = vector.load %arg3[%c0_3, %c0_4] : memref<1x128xf32, #tpu.memory_space<vmem>>, vector<1x128xf32>
    %4 = vector.broadcast %3 : vector<1x128xf32> to vector<8x128xf32>
    %5 = arith.addf %2, %4 : vector<8x128xf32>
    %cst_5 = arith.constant 0.000000e+00 : f32
    %6 = vector.broadcast %cst_5 : f32 to vector<8x128xf32>
    %7 = arith.maximumf %5, %6 : vector<8x128xf32>
    %c0_6 = arith.constant 0 : index
    %c0_7 = arith.constant 0 : index
    %8 = vector.load %arg7[%c0_6, %c0_7] : memref<1x128xf32, #tpu.memory_space<vmem>>, vector<1x128xf32>
    %c0_8 = arith.constant 0 : index
    %c0_9 = arith.constant 0 : index
    %c0_10 = arith.constant 0 : index
    %9 = vector.load %arg4[%c0_8, %c0_9, %c0_10] : memref<1x128x128xf32, #tpu.memory_space<vmem>>, vector<1x128x128xf32>
    %10 = vector.shape_cast %9 : vector<1x128x128xf32> to vector<128x128xf32>
    %cst_11 = arith.constant dense<0.000000e+00> : vector<8x128xf32>
    %11 = tpu.matmul %7, %10, %cst_11 {dimension_numbers = #tpu.dot_dimension_numbers<[1], [0], [0], [1], [0, 0, 1, 1], [], []>} : vector<8x128xf32>, vector<128x128xf32>, vector<8x128xf32> -> vector<8x128xf32>
    %c0_12 = arith.constant 0 : index
    %c0_13 = arith.constant 0 : index
    %12 = vector.load %arg5[%c0_12, %c0_13] : memref<1x128xf32, #tpu.memory_space<vmem>>, vector<1x128xf32>
    %13 = vector.broadcast %12 : vector<1x128xf32> to vector<8x128xf32>
    %14 = arith.addf %11, %13 : vector<8x128xf32>
    %cst_14 = arith.constant 0.000000e+00 : f32
    %15 = vector.broadcast %cst_14 : f32 to vector<8x128xf32>
    %16 = arith.maximumf %14, %15 : vector<8x128xf32>
    %c0_15 = arith.constant 0 : index
    %c0_16 = arith.constant 0 : index
    %c0_17 = arith.constant 0 : index
    %17 = vector.load %arg6[%c0_15, %c0_16, %c0_17] : memref<1x128x128xf32, #tpu.memory_space<vmem>>, vector<1x128x128xf32>
    %18 = vector.shape_cast %17 : vector<1x128x128xf32> to vector<128x128xf32>
    %cst_18 = arith.constant dense<0.000000e+00> : vector<8x128xf32>
    %19 = tpu.matmul %16, %18, %cst_18 {dimension_numbers = #tpu.dot_dimension_numbers<[1], [0], [0], [1], [0, 0, 1, 1], [], []>} : vector<8x128xf32>, vector<128x128xf32>, vector<8x128xf32> -> vector<8x128xf32>
    %20 = vector.broadcast %8 : vector<1x128xf32> to vector<8x128xf32>
    %21 = arith.addf %20, %19 : vector<8x128xf32>
    %c0_19 = arith.constant 0 : index
    %c0_20 = arith.constant 0 : index
    %22 = vector.load %arg8[%c0_19, %c0_20] : memref<8x128xf32, #tpu.memory_space<vmem>>, vector<8x128xf32>
    tpu.vector_store %arg8[%c0_19, %c0_20], %21 {strides = array<i32>} : memref<8x128xf32, #tpu.memory_space<vmem>>, vector<8x128xf32>,
    return
  }
  func.func @transform_0(%arg0: i32) -> (i32, i32) {
    %c0_i32 = arith.constant 0 : i32
    %c0_i32_0 = arith.constant 0 : i32
    return %arg0, %c0_i32 : i32, i32
  }
  func.func @transform_1(%arg0: i32) -> (i32, i32) {
    %c0_i32 = arith.constant 0 : i32
    %c0_i32_0 = arith.constant 0 : i32
    %c0_i32_1 = arith.constant 0 : i32
    return %c0_i32, %c0_i32_0 : i32, i32
  }
  func.func @transform_2(%arg0: i32) -> (i32, i32) {
    %c0_i32 = arith.constant 0 : i32
    %c0_i32_0 = arith.constant 0 : i32
    %c0_i32_1 = arith.constant 0 : i32
    return %c0_i32, %c0_i32_0 : i32, i32
  }
  func.func @transform_3(%arg0: i32) -> (i32, i32, i32) {
    %c0_i32 = arith.constant 0 : i32
    %c0_i32_0 = arith.constant 0 : i32
    %c0_i32_1 = arith.constant 0 : i32
    %c0_i32_2 = arith.constant 0 : i32
    return %c0_i32, %c0_i32_0, %c0_i32_1 : i32, i32, i32
  }
  func.func @transform_4(%arg0: i32) -> (i32, i32) {
    %c0_i32 = arith.constant 0 : i32
    %c0_i32_0 = arith.constant 0 : i32
    %c0_i32_1 = arith.constant 0 : i32
    return %c0_i32, %c0_i32_0 : i32, i32
  }
  func.func @transform_5(%arg0: i32) -> (i32, i32, i32) {
    %c0_i32 = arith.constant 0 : i32
    %c0_i32_0 = arith.constant 0 : i32
    %c0_i32_1 = arith.constant 0 : i32
    %c0_i32_2 = arith.constant 0 : i32
    return %c0_i32, %c0_i32_0, %c0_i32_1 : i32, i32, i32
  }
  func.func @transform_6(%arg0: i32) -> (i32, i32) {
    %c0_i32 = arith.constant 0 : i32
    %c0_i32_0 = arith.constant 0 : i32
    %c0_i32_1 = arith.constant 0 : i32
    return %c0_i32, %c0_i32_0 : i32, i32
  }
  func.func @transform_7(%arg0: i32) -> (i32, i32) {
    %c0_i32 = arith.constant 0 : i32
    %c0_i32_0 = arith.constant 0 : i32
    return %arg0, %c0_i32 : i32, i32
  }
}

</mosaic_0001>

<bundles_post_ra>
// kernel: tpu_custom_call.1
= control target key start
LH: loop header
LB: loop body
LE: loop exit
PB: predicated region body
PF: predicated region fallthrough
CT: control target
= control target key end

     0   :  { %12 = vsyncpa [#allocation3], 0  ;;  %s437_s0 = inlined_call_operand.hbm [shape: f32[8,12], index: 0, kind: input, shape index: {}]   ;;  %s438_s1 = inlined_call_operand.hbm [shape: f32[12,128], index: 1, kind: input, shape index: {}]   ;;  %s439_s2 = inlined_call_operand.vmem [shape: f32[1,128], index: 2, kind: input, shape index: {}]   ;;  %s440_s3 = inlined_call_operand.hbm [shape: f32[1,128,128], index: 3, kind: input, shape index: {}]   ;;  %s441_s4 = inlined_call_operand.vmem [shape: f32[1,128], index: 4, kind: input, shape index: {}]   ;;  %s442_s5 = inlined_call_operand.hbm [shape: f32[1,128,128], index: 5, kind: input, shape index: {}]   ;;  %s443_s6 = inlined_call_operand.vmem [shape: f32[1,128], index: 6, kind: input, shape index: {}]   ;;  %s444_s7 = inlined_call_operand.hbm [shape: f32[8,128], index: 7, kind: output, shape index: {}]  }
   0x1   :  { %13 = vsyncpa [#allocation6], 0 }
   0x2   :  { %14 = vsyncpa [#allocation9], 0  ;;  %s31_s26 = sshll.u32 %s438_s1, 4  ;;  %s32_s26 = int_to_ptr.hbm [resolvable:$true] %s31_s26 }
   0x3   :  { %15 = vsyncpa [#allocation4], 0  ;;  %s366_s27 = smov [#allocation5]   ;;  %s21_s8 = sshll.u32 %s437_s0, 4  ;;  %s22_s8 = int_to_ptr.hbm [resolvable:$true] %s21_s8 }
   0x4   :  { %s33_s28 = sshll.u32 %s366_s27, 4  ;;  %s367_s9 = smov 128   ;;  %s34_s28 = int_to_ptr.vmem [resolvable:$true] %s33_s28 }
   0x5   :  { %s368_s10 = smov 8   ;;  %s369_s11 = smov [#allocation2]  }
   0x6   :  { %39 = dma.hbm_to_vmem [thread:$0]  %s32_s26, 256, %s34_s28, [#allocation6], %s367_s9, %s367_s9, %s368_s10  }
   0x7   :  { %s23_s12 = sshll.u32 %s369_s11, 4  ;;  %s46_s15 = sshll.u32 %s440_s3, 4  ;;  %s24_s12 = int_to_ptr.vmem [resolvable:$true] %s23_s12  ;;  %s47_s15 = int_to_ptr.hbm [resolvable:$true] %s46_s15 }
   0x8   :  { %26 = dma.hbm_to_vmem [thread:$0]  %s22_s8, 128, %s24_s12, [#allocation3]  }
   0x9   :  { %s61_s17 = sshll.u32 %s442_s5, 4  ;;  %s370_s18 = smov [#allocation7]   ;;  %s62_s17 = int_to_ptr.hbm [resolvable:$true] %s61_s17 }
   0xa   :  { %s48_s19 = sshll.u32 %s370_s18, 4  ;;  %s371_s0 = smov [#allocation8]   ;;  %s49_s19 = int_to_ptr.vmem [resolvable:$true] %s48_s19 }
   0xb   :  { %54 = dma.hbm_to_vmem [thread:$0]  %s47_s15, 2048, %s49_s19, [#allocation6], %s367_s9, %s367_s9, %s368_s10  }
   0xc   :  { %s63_s20 = sshll.u32 %s371_s0, 4  ;;  %s64_s20 = int_to_ptr.vmem [resolvable:$true] %s63_s20 }
   0xd   :  { %69 = dma.hbm_to_vmem [thread:$0]  %s62_s17, 2048, %s64_s20, [#allocation9], %s367_s9, %s367_s9, %s368_s10  }
   0xe   :  { %358 = dma.done.wait [#allocation3], 128  }
   0xf   :  { %359 = vsyncadd [#allocation3], 4294967168 }
  0x10   :  { %360 = dma.done.wait [#allocation6], 2304  }
  0x11   :  { %361 = vsyncadd [#allocation6], 4294964992 }
  0x12   :  { %362 = dma.done.wait [#allocation9], 2048  }
  0x13   :  { %363 = vsyncadd [#allocation9], 4294965248  ;;  %vm99_vm0 = vcmask 1043456   ;;  %v90_v0 = vld [vmem:[#allocation5 + $0x8] sm:$0xf]  ;;  %v89_v1 = vld [vmem:[#allocation5] sm:$0xff] }
  0x14   :  { %226 = vmatpush.msk.msra.mxu0 %vm99_vm0, %v90_v0  ;;  %v88_v2 = vld [vmem:[#allocation2] sm:$0xff]  ;;  %vm95_vm1 = vcmask 97280   ;;  %v140_v3 = vld [vmem:[#allocation7 + $0x78] sm:$0xff]  ;;  %v139_v4 = vld [vmem:[#allocation7 + $0x70] sm:$0xff]  ;;  %s372_s24 = smov [#allocation10]   ;;  %s214_s28 = sshll.u32 %s444_s7, 4  ;;  %s215_s28 = int_to_ptr.hbm [resolvable:$true] %s214_s28 }
  0x15   :  { %145 = vmatpush.msra.mxu1 %v140_v3  ;;  %v138_v5 = vld [vmem:[#allocation7 + $0x68] sm:$0xff]  ;;  %v137_v6 = vld [vmem:[#allocation7 + $0x60] sm:$0xff]  ;;  %v136_v7 = vld [vmem:[#allocation7 + $0x58] sm:$0xff]  ;;  %s212_s25 = sshll.u32 %s372_s24, 4  ;;  %s213_s25 = int_to_ptr.vmem [resolvable:$true] %s212_s25 }
  0x16   :  { %118 = vmatpush.msra.mxu0 %v89_v1  ;;  %v135_v8 = vld [vmem:[#allocation7 + $0x50] sm:$0xff]  ;;  %v134_v9 = vld [vmem:[#allocation7 + $0x48] sm:$0xff]  ;;  %v133_v10 = vld [vmem:[#allocation7 + $0x40] sm:$0xff] }
  0x17   :  { %227 = vmatmul.msk.f32.vlgmr.msra.gmra.mxu0 %vm95_vm1, %v88_v2  ;;  %146 = vmatpush.msra.mxu1 %v139_v4  ;;  %v132_v11 = vld [vmem:[#allocation7 + $0x38] sm:$0xff]  ;;  %v131_v12 = vld [vmem:[#allocation7 + $0x30] sm:$0xff]  ;;  %v130_v13 = vld [vmem:[#allocation7 + $0x28] sm:$0xff] }
  0x18   :  { %v129_v14 = vld [vmem:[#allocation7 + $0x20] sm:$0xff]  ;;  %v128_v15 = vld [vmem:[#allocation7 + $0x18] sm:$0xff]  ;;  %v127_v16 = vld [vmem:[#allocation7 + $0x10] sm:$0xff] }
  0x19   :  { %147 = vmatpush.msra.mxu1 %v138_v5  ;;  %v126_v17 = vld [vmem:[#allocation7 + $0x8] sm:$0xff]  ;;  %v125_v18 = vld [vmem:[#allocation7] sm:$0xff]  ;;  %v181_v19 = vld [vmem:[#allocation8 + $0x78] sm:$0xff] }
  0x1a   :  { %v180_v20 = vld [vmem:[#allocation8 + $0x70] sm:$0xff]  ;;  %182 = vmatpush.msra.mxu2 %v181_v19  ;;  %v179_v21 = vld [vmem:[#allocation8 + $0x68] sm:$0xff]  ;;  %v178_v22 = vld [vmem:[#allocation8 + $0x60] sm:$0xff] }
  0x1b   :  { %148 = vmatpush.msra.mxu1 %v137_v6  ;;  %v177_v23 = vld [vmem:[#allocation8 + $0x58] sm:$0xff]  ;;  %v176_v24 = vld [vmem:[#allocation8 + $0x50] sm:$0xff]  ;;  %v175_v25 = vld [vmem:[#allocation8 + $0x48] sm:$0xff] }
  0x1c   :  { %183 = vmatpush.msra.mxu2 %v180_v20  ;;  %v174_v26 = vld [vmem:[#allocation8 + $0x40] sm:$0xff]  ;;  %v173_v27 = vld [vmem:[#allocation8 + $0x38] sm:$0xff]  ;;  %v172_v28 = vld [vmem:[#allocation8 + $0x30] sm:$0xff] }
  0x1d   :  { %149 = vmatpush.msra.mxu1 %v136_v7  ;;  %v171_v29 = vld [vmem:[#allocation8 + $0x28] sm:$0xff]  ;;  %v170_v30 = vld [vmem:[#allocation8 + $0x20] sm:$0xff]  ;;  %v169_v31 = vld [vmem:[#allocation8 + $0x18] sm:$0xff] }
  0x1e   :  { %184 = vmatpush.msra.mxu2 %v179_v21  ;;  %v235_v32 = vld [vmem:[%s439_s2] ss:$0 sm:$0xff]  ;;  %v168_v36 = vld [vmem:[#allocation8 + $0x10] sm:$0xff]  ;;  %v166_v38 = vld [vmem:[#allocation8] sm:$0xff] }
  0x1f   :  { %150 = vmatpush.msra.mxu1 %v135_v8  ;;  %v167_v37 = vld [vmem:[#allocation8 + $0x8] sm:$0xff] }
  0x20   :  { %185 = vmatpush.msra.mxu2 %v178_v22  ;;  %v236_v39 = vld [vmem:[%s441_s4] ss:$0 sm:$0xff] }
  0x21   :  { %151 = vmatpush.msra.mxu1 %v134_v9  ;;  %v237_v43 = vld [vmem:[%s443_s6] ss:$0 sm:$0xff] }
  0x22   :  { %186 = vmatpush.msra.mxu2 %v177_v23 }
  0x23   :  { %152 = vmatpush.msra.mxu1 %v133_v10 }
  0x24   :  { %187 = vmatpush.msra.mxu2 %v176_v24 }
  0x25   :  { %153 = vmatpush.msra.mxu1 %v132_v11 }
  0x26   :  { %188 = vmatpush.msra.mxu2 %v175_v25 }
  0x27   :  { %154 = vmatpush.msra.mxu1 %v131_v12 }
  0x28   :  { %189 = vmatpush.msra.mxu2 %v174_v26 }
  0x29   :  { %155 = vmatpush.msra.mxu1 %v130_v13 }
  0x2a   :  { %190 = vmatpush.msra.mxu2 %v173_v27 }
  0x2b   :  { %156 = vmatpush.msra.mxu1 %v129_v14 }
  0x2c   :  { %191 = vmatpush.msra.mxu2 %v172_v28 }
  0x2d   :  { %157 = vmatpush.msra.mxu1 %v128_v15 }
  0x2e   :  { %192 = vmatpush.msra.mxu2 %v171_v29 }
  0x2f   :  { %158 = vmatpush.msra.mxu1 %v127_v16 }
  0x30   :  { %193 = vmatpush.msra.mxu2 %v170_v30 }
  0x31   :  { %159 = vmatpush.msra.mxu1 %v126_v17 }
  0x32   :  { %194 = vmatpush.msra.mxu2 %v169_v31 }
  0x33   :  { %160 = vmatpush.msra.mxu1 %v125_v18 }
  0x34   :  { %195 = vmatpush.msra.mxu2 %v168_v36 }
  0x36   :  { %196 = vmatpush.msra.mxu2 %v167_v37 }
  0x38   :  { %197 = vmatpush.msra.mxu2 %v166_v38 }
  0x94   :  { %v120_v33 = vpop.f32.mrf.mxu0 }
  0x95   :  { %v121_v34 = vadd.f32 %v235_v32, %v120_v33 }
  0x97   :  { %v123_v35 = vmax.f32 %v121_v34, 0.0 }
  0x99   :  { %161 = vmatmul.f32.vlgmr.msra.gmra.mxu1 %v123_v35 }
 0x116   :  { %v162_v40 = vpop.f32.mrf.mxu1 }
 0x117   :  { %v163_v41 = vadd.f32 %v236_v39, %v162_v40 }
 0x119   :  { %v165_v42 = vmax.f32 %v163_v41, 0.0 }
 0x11b   :  { %198 = vmatmul.f32.vlgmr.msra.gmra.mxu2 %v165_v42 }
 0x19e   :  { %v199_v44 = vpop.f32.mrf.mxu2 }
 0x19f   :  { %v205_v45 = vadd.f32 %v237_v43, %v199_v44 }
 0x1a1   :  { %206 = vst [vmem:[#allocation10] sm:$0xff] %v205_v45 }
 0x1a2   :  { %217 = dma.vmem_to_hbm [thread:$0]  %s213_s25, 128, %s215_s28, [#allocation4]  }
 0x1a3   :  { %364 = dma.done.wait [#allocation4], 128  }
 0x1a4   :  { %365 = vsyncadd [#allocation4], 4294967168 }
 0x1a5   :  { %222 = vsyncpa [#allocation3], 1 }
 0x1a6   :  { %223 = vsyncpa [#allocation6], 1 }
 0x1a7   :  { %224 = vsyncpa [#allocation9], 1 }
 0x1a8   :  { %225 = vsyncpa [#allocation4], 1 }

</bundles_post_ra>
